<compile_context>
chip_gen: v6e
topology: v6e:2x2x1
jax: 0.10.0
libtpu: 0.0.40
codegen_flags: <defaults>
</compile_context>

<pallas_src>
import functools

import jax
import jax.numpy as jnp
import numpy as np
from jax.experimental import pallas as pl
from jax.experimental.pallas import tpu as pltpu


def _round_up(x, m):
    return (x + m - 1) // m * m


# ----------------------------------------------------------------------------
# Kernel 1: fused encoder — in-kernel gather (one-hot @ table on the MXU),
# masked mean pooling, projection.  Tiled over rows (grid axis 0, parallel).
# ----------------------------------------------------------------------------
def _encoder_kernel(ids_ref, typ_ref, mask_ref, table_ref, proj_ref, out_ref):
    tn, s = ids_ref.shape
    vt = table_ref.shape[0]          # multiple of 128 (lane-dense)

    ids = ids_ref[...]               # [tn, s] int32 word ids (< V_pad)
    typ = typ_ref[...]               # [tn, s] int32 type ids (shifted by V_pad)
    mask = mask_ref[...]             # [tn, s] f32

    # Masked one-hot "hit counts" against the fused [word ; type] table.  Word
    # ids and shifted type ids index disjoint rows, so OR of the comparisons
    # equals the sum of the two one-hots.  Last dim (vt) is lane-dense.
    iota = jax.lax.broadcasted_iota(jnp.int32, (tn, s, vt), 2)
    hit = (iota == ids[:, :, None]) | (iota == typ[:, :, None])
    moh = hit.astype(jnp.float32) * mask[:, :, None]           # [tn, s, vt]
    cnt = jnp.sum(moh, axis=1)                                  # [tn, vt]

    # Gather + masked-sum pooling collapse into one MXU matmul (contraction
    # dim vt is a multiple of 128).
    pooled_sum = jnp.dot(cnt, table_ref[...],
                         preferred_element_type=jnp.float32)    # [tn, H_in]
    denom = jnp.maximum(jnp.sum(mask, axis=-1, keepdims=True), 1.0)   # [tn, 1]
    pooled = pooled_sum * pl.reciprocal(denom, approx=False)

    out_ref[...] = jnp.dot(pooled, proj_ref[...],
                           preferred_element_type=jnp.float32)  # [tn, H_out]


def _encode(ids, typ, mask, table, proj, *, block_n):
    n, s = ids.shape
    vt, h_in = table.shape
    h_out = proj.shape[1]
    assert n % block_n == 0
    return pl.pallas_call(
        _encoder_kernel,
        out_shape=jax.ShapeDtypeStruct((n, h_out), jnp.float32),
        grid_spec=pltpu.PrefetchScalarGridSpec(
            num_scalar_prefetch=0,
            grid=(n // block_n,),
            in_specs=[
                pl.BlockSpec((block_n, s), lambda i: (i, 0)),    # word ids
                pl.BlockSpec((block_n, s), lambda i: (i, 0)),    # type ids
                pl.BlockSpec((block_n, s), lambda i: (i, 0)),    # attention mask
                pl.BlockSpec((vt, h_in), lambda i: (0, 0)),      # fused emb table (resident)
                pl.BlockSpec((h_in, h_out), lambda i: (0, 0)),   # projection (resident)
            ],
            out_specs=pl.BlockSpec((block_n, h_out), lambda i: (i, 0)),
        ),
        compiler_params=pltpu.CompilerParams(
            dimension_semantics=("parallel",)),
    )(ids, typ, mask, table, proj)


# ----------------------------------------------------------------------------
# Kernel 2: scoring + softmax + soft-target cross-entropy loss.
# ----------------------------------------------------------------------------
def _score_loss_kernel(q_ref, d_ref, gold_ref, loss_ref, probs_ref,
                       *, inv_temperature, inv_batch, reuse_probs):
    q = q_ref[...]             # [B, H]
    d = d_ref[...]             # [B, K, H]
    gold_soft = gold_ref[...]  # [B, K] = softmax(gold / T), precomputed in wrapper

    def _softmax(x):
        m = jnp.max(x, axis=-1, keepdims=True)
        e = jnp.exp(x - m)
        return e * pl.reciprocal(jnp.sum(e, axis=-1, keepdims=True), approx=True)

    # scores = torch.einsum('ij,ikj->ik', query_reps, docs_reps)  (batched MXU dot)
    s3 = jnp.einsum('bqh,bkh->bqk', q[:, None, :], d,
                    preferred_element_type=jnp.float32)      # [B, 1, K]
    scores = s3[:, 0, :]                                      # [B, K]

    probs_t = _softmax(scores * inv_temperature)              # softmax(scores / T)

    # nn.CrossEntropyLoss()(probs_t, gold_soft): log_softmax is applied to the
    # already-softmaxed probs_t — kept verbatim from the PyTorch trainer.
    m = jnp.max(probs_t, axis=-1, keepdims=True)
    lse = jnp.log(jnp.sum(jnp.exp(probs_t - m), axis=-1, keepdims=True)) + m
    log_sm = probs_t - lse
    per_row = -jnp.sum(gold_soft * log_sm, axis=-1, keepdims=True)        # [B, 1]
    loss_ref[...] = jnp.sum(per_row, axis=0, keepdims=True) * inv_batch   # [1, 1]
    # TODO(synk): loss stays a (1,1) VMEM output; an SMEM scalar output is a
    # negligible further win at these shapes.

    # Returned value #2 is softmax(scores) WITHOUT temperature; it equals
    # probs_t when T == 1, so the exp/reciprocal chain is reused in that case.
    if reuse_probs:
        probs_ref[...] = probs_t
    else:
        probs_ref[...] = _softmax(scores)


# ----------------------------------------------------------------------------
# Plain-JAX glue (parameters, table fusion, padding, reshapes).
# ----------------------------------------------------------------------------
def init_params(key, vocab=32, n_types=2, h_in=128, h_out=128):
    k1, k2, k3 = jax.random.split(key, 3)
    return dict(
        word_emb=0.02 * jax.random.normal(k1, (vocab, h_in), jnp.float32),
        type_emb=0.02 * jax.random.normal(k2, (n_types, h_in), jnp.float32),
        proj=0.02 * jax.random.normal(k3, (h_in, h_out), jnp.float32),
    )


def kd_reader_to_retriever_forward(params,
                                   query_input_ids, query_token_type_ids,
                                   query_attention_mask,
                                   documents_input_ids, documents_token_type_ids,
                                   documents_attention_mask,
                                   gold_metric_scores,
                                   *, temperature=1.0, block_n=None):
    B, K, S = documents_input_ids.shape
    V, H_in = params["word_emb"].shape
    T = params["type_emb"].shape[0]

    # Fuse word + type tables into a single table whose row count is padded to
    # a multiple of 128 so the in-kernel one-hot compare / hit-count tensor and
    # the MXU contraction dim are all lane-dense; shift type ids by V_pad.
    v_pad = _round_up(V, 8)
    vt_total = _round_up(v_pad + T, 128)
    table = (jnp.zeros((vt_total, H_in), jnp.float32)
             .at[:V].set(params["word_emb"])
             .at[v_pad:v_pad + T].set(params["type_emb"]))

    # Fuse the query + document encoder calls into a single tiled launch
    # (same flatten as the PyTorch .view(B * ctx_size, -1)).
    ids = jnp.concatenate(
        [query_input_ids.astype(jnp.int32),
         documents_input_ids.reshape(B * K, S).astype(jnp.int32)], axis=0)
    typ = jnp.concatenate(
        [query_token_type_ids.astype(jnp.int32),
         documents_token_type_ids.reshape(B * K, S).astype(jnp.int32)], axis=0) + v_pad
    mask = jnp.concatenate(
        [query_attention_mask.astype(jnp.float32),
         documents_attention_mask.reshape(B * K, S).astype(jnp.float32)], axis=0)

    n = B + B * K
    if block_n is None:
        # Single grid step for small problems; 128-row tiles otherwise.
        block_n = min(128, _round_up(n, 8))
    n_pad = _round_up(n, block_n)
    if n_pad != n:                      # zero rows: mask==0 => reps==0, sliced off
        pad = n_pad - n
        ids = jnp.pad(ids, ((0, pad), (0, 0)))
        typ = jnp.pad(typ, ((0, pad), (0, 0)))
        mask = jnp.pad(mask, ((0, pad), (0, 0)))

    reps = _encode(ids, typ, mask, table, params["proj"], block_n=block_n)
    query_reps = reps[:B]                                # [B, H]
    docs_reps = reps[B:n].reshape(B, K, -1)              # [B, K, H]

    # greater_is_better=True branch: gold_scores[i, j] = scores_gold[i][j][metric]
    # (dict/list extraction is host-side glue; numeric values arrive here).
    gold_scores = gold_metric_scores.astype(jnp.float32)            # [B, K]
    # TODO(synk): greater_is_better=False branch parses target_txt strings on
    # the host (no Pallas equivalent); only the numeric gold path is implemented.

    # Soft gold targets are pure input preprocessing — keep them off the kernel EUP.
    gold_soft = jax.nn.softmax(gold_scores / temperature, axis=-1)

    kernel = functools.partial(
        _score_loss_kernel,
        inv_temperature=1.0 / float(temperature),
        inv_batch=1.0 / float(B),
        reuse_probs=(float(temperature) == 1.0),
    )
    loss, probs = pl.pallas_call(
        kernel,
        out_shape=(jax.ShapeDtypeStruct((1, 1), jnp.float32),
                   jax.ShapeDtypeStruct((B, K), jnp.float32)),
    )(query_reps, docs_reps, gold_soft)

    return loss[0, 0], probs, gold_scores


# Pure-JAX reference of the PyTorch semantics (for a loose sanity check).
def _reference_forward(params, q_ids, q_typ, q_mask, d_ids, d_typ, d_mask, gold,
                       *, temperature=1.0):
    def enc(ids, typ, mask):
        emb = params["word_emb"][ids] + params["type_emb"][typ]
        m = mask.astype(jnp.float32)[..., None]
        pooled = (emb * m).sum(1) / jnp.maximum(m.sum(1), 1.0)
        return pooled @ params["proj"]

    B, K, S = d_ids.shape
    qr = enc(q_ids, q_typ, q_mask)
    dr = enc(d_ids.reshape(B * K, S), d_typ.reshape(B * K, S),
             d_mask.reshape(B * K, S)).reshape(B, K, -1)
    scores = jnp.einsum('ij,ikj->ik', qr, dr)
    probs = jax.nn.softmax(scores / temperature, axis=-1)
    gold_soft = jax.nn.softmax(gold.astype(jnp.float32) / temperature, axis=-1)
    loss = -(gold_soft * jax.nn.log_softmax(probs, axis=-1)).sum(-1).mean()
    return loss, jax.nn.softmax(scores, axis=-1), gold.astype(jnp.float32)


if __name__ == "__main__":
    key = jax.random.PRNGKey(0)
    B, K, S, V, H = 2, 4, 8, 32, 128
    kp, k1, k2, k3 = jax.random.split(key, 4)

    params = init_params(kp, vocab=V, n_types=2, h_in=H, h_out=H)

    query_input_ids = jax.random.randint(k1, (B, S), 0, V, dtype=jnp.int32)
    query_token_type_ids = jnp.zeros((B, S), jnp.int32)
    query_attention_mask = jnp.ones((B, S), jnp.int32)

    documents_input_ids = jax.random.randint(k2, (B, K, S), 0, V, dtype=jnp.int32)
    documents_token_type_ids = jnp.zeros((B, K, S), jnp.int32)
    documents_attention_mask = jnp.ones((B, K, S), jnp.int32)

    # scores_gold[i][j][reader_gold_metric] values, pre-extracted to an array.
    gold_metric_scores = jax.random.uniform(k3, (B, K), jnp.float32)

    loss, probs, gold = kd_reader_to_retriever_forward(
        params,
        query_input_ids, query_token_type_ids, query_attention_mask,
        documents_input_ids, documents_token_type_ids, documents_attention_mask,
        gold_metric_scores, temperature=1.0)
    jax.block_until_ready((loss, probs, gold))

    ref_loss, ref_probs, ref_gold = _reference_forward(
        params, query_input_ids, query_token_type_ids, query_attention_mask,
        documents_input_ids, documents_token_type_ids, documents_attention_mask,
        gold_metric_scores, temperature=1.0)
    jax.block_until_ready((ref_loss, ref_probs, ref_gold))

    assert np.allclose(np.asarray(loss), np.asarray(ref_loss), rtol=2e-2, atol=2e-2)
    assert np.allclose(np.asarray(probs), np.asarray(ref_probs), rtol=2e-2, atol=2e-2)
    assert np.allclose(np.asarray(gold), np.asarray(ref_gold))

    print("KERNEL_OK")
</pallas_src>

<mosaic_0001>
module attributes {stable_mosaic.version = 11 : i64} {
  func.func @_encoder_kernel(%arg0: i32, %arg1: memref<16x8xi32, #tpu.memory_space<vmem>>, %arg2: memref<16x8xi32, #tpu.memory_space<vmem>>, %arg3: memref<16x8xf32, #tpu.memory_space<vmem>>, %arg4: memref<128x128xf32, #tpu.memory_space<vmem>>, %arg5: memref<128x128xf32, #tpu.memory_space<vmem>>, %arg6: memref<16x128xf32, #tpu.memory_space<vmem>>) attributes {dimension_semantics = [#tpu.dimension_semantics<parallel>], iteration_bounds = array<i64: 1>, scalar_prefetch = 0 : i64, scratch_operands = 0 : i64, tpu.core_type = #tpu.core_type<tc>, window_params = [{transform_indices = @transform_0, window_bounds = array<i64: 16, 8>}, {transform_indices = @transform_1, window_bounds = array<i64: 16, 8>}, {transform_indices = @transform_2, window_bounds = array<i64: 16, 8>}, {pipeline_mode = #tpu.pipeline_mode<synchronous>, transform_indices = @transform_3, window_bounds = array<i64: 128, 128>}, {pipeline_mode = #tpu.pipeline_mode<synchronous>, transform_indices = @transform_4, window_bounds = array<i64: 128, 128>}, {transform_indices = @transform_5, window_bounds = array<i64: 16, 128>}]} {
    %c0 = arith.constant 0 : index
    %c0_0 = arith.constant 0 : index
    %0 = vector.load %arg1[%c0, %c0_0] : memref<16x8xi32, #tpu.memory_space<vmem>>, vector<16x8xi32>
    %c0_1 = arith.constant 0 : index
    %c0_2 = arith.constant 0 : index
    %1 = vector.load %arg2[%c0_1, %c0_2] : memref<16x8xi32, #tpu.memory_space<vmem>>, vector<16x8xi32>
    %c0_3 = arith.constant 0 : index
    %c0_4 = arith.constant 0 : index
    %2 = vector.load %arg3[%c0_3, %c0_4] : memref<16x8xf32, #tpu.memory_space<vmem>>, vector<16x8xf32>
    %3 = tpu.iota {dimensions = array<i32: 2>} : vector<16x8x128xi32>
    %4 = vector.shape_cast %0 : vector<16x8xi32> to vector<16x8x1xi32>
    %5 = vector.broadcast %4 : vector<16x8x1xi32> to vector<16x8x128xi32>
    %6 = arith.cmpi eq, %3, %5 : vector<16x8x128xi32>
    %7 = vector.shape_cast %1 : vector<16x8xi32> to vector<16x8x1xi32>
    %8 = vector.broadcast %7 : vector<16x8x1xi32> to vector<16x8x128xi32>
    %9 = arith.cmpi eq, %3, %8 : vector<16x8x128xi32>
    %10 = arith.ori %6, %9 : vector<16x8x128xi1>
    %11 = arith.extui %10 : vector<16x8x128xi1> to vector<16x8x128xi32>
    %12 = arith.sitofp %11 : vector<16x8x128xi32> to vector<16x8x128xf32>
    %13 = vector.shape_cast %2 : vector<16x8xf32> to vector<16x8x1xf32>
    %14 = vector.broadcast %13 : vector<16x8x1xf32> to vector<16x8x128xf32>
    %15 = arith.mulf %12, %14 : vector<16x8x128xf32>
    %cst = arith.constant dense<0.000000e+00> : vector<16x128xf32>
    %16 = vector.multi_reduction <add>, %15, %cst [1] : vector<16x8x128xf32> to vector<16x128xf32>
    %c0_5 = arith.constant 0 : index
    %c0_6 = arith.constant 0 : index
    %17 = vector.load %arg4[%c0_5, %c0_6] : memref<128x128xf32, #tpu.memory_space<vmem>>, vector<128x128xf32>
    %cst_7 = arith.constant dense<0.000000e+00> : vector<16x128xf32>
    %18 = tpu.matmul %16, %17, %cst_7 {dimension_numbers = #tpu.dot_dimension_numbers<[1], [0], [0], [1], [0, 0, 1, 1], [], []>} : vector<16x128xf32>, vector<128x128xf32>, vector<16x128xf32> -> vector<16x128xf32>
    %cst_8 = arith.constant dense<0.000000e+00> : vector<16xf32>
    %19 = vector.multi_reduction <add>, %2, %cst_8 [1] : vector<16x8xf32> to vector<16xf32>
    %20 = vector.shape_cast %19 : vector<16xf32> to vector<16x1xf32>
    %cst_9 = arith.constant 1.000000e+00 : f32
    %21 = vector.broadcast %cst_9 : f32 to vector<16x1xf32>
    %22 = arith.maximumf %20, %21 : vector<16x1xf32>
    %23 = tpu.reciprocal %22 : vector<16x1xf32> -> vector<16x1xf32>
    %24 = vector.broadcast %23 : vector<16x1xf32> to vector<16x128xf32>
    %25 = arith.mulf %18, %24 : vector<16x128xf32>
    %c0_10 = arith.constant 0 : index
    %c0_11 = arith.constant 0 : index
    %26 = vector.load %arg5[%c0_10, %c0_11] : memref<128x128xf32, #tpu.memory_space<vmem>>, vector<128x128xf32>
    %cst_12 = arith.constant dense<0.000000e+00> : vector<16x128xf32>
    %27 = tpu.matmul %25, %26, %cst_12 {dimension_numbers = #tpu.dot_dimension_numbers<[1], [0], [0], [1], [0, 0, 1, 1], [], []>} : vector<16x128xf32>, vector<128x128xf32>, vector<16x128xf32> -> vector<16x128xf32>
    %c0_13 = arith.constant 0 : index
    %c0_14 = arith.constant 0 : index
    %28 = vector.load %arg6[%c0_13, %c0_14] : memref<16x128xf32, #tpu.memory_space<vmem>>, vector<16x128xf32>
    tpu.vector_store %arg6[%c0_13, %c0_14], %27 {strides = array<i32>} : memref<16x128xf32, #tpu.memory_space<vmem>>, vector<16x128xf32>,
    return
  }
  func.func @transform_0(%arg0: i32) -> (i32, i32) {
    %c0_i32 = arith.constant 0 : i32
    %c0_i32_0 = arith.constant 0 : i32
    return %arg0, %c0_i32 : i32, i32
  }
  func.func @transform_1(%arg0: i32) -> (i32, i32) {
    %c0_i32 = arith.constant 0 : i32
    %c0_i32_0 = arith.constant 0 : i32
    return %arg0, %c0_i32 : i32, i32
  }
  func.func @transform_2(%arg0: i32) -> (i32, i32) {
    %c0_i32 = arith.constant 0 : i32
    %c0_i32_0 = arith.constant 0 : i32
    return %arg0, %c0_i32 : i32, i32
  }
  func.func @transform_3(%arg0: i32) -> (i32, i32) {
    %c0_i32 = arith.constant 0 : i32
    %c0_i32_0 = arith.constant 0 : i32
    %c0_i32_1 = arith.constant 0 : i32
    return %c0_i32, %c0_i32_0 : i32, i32
  }
  func.func @transform_4(%arg0: i32) -> (i32, i32) {
    %c0_i32 = arith.constant 0 : i32
    %c0_i32_0 = arith.constant 0 : i32
    %c0_i32_1 = arith.constant 0 : i32
    return %c0_i32, %c0_i32_0 : i32, i32
  }
  func.func @transform_5(%arg0: i32) -> (i32, i32) {
    %c0_i32 = arith.constant 0 : i32
    %c0_i32_0 = arith.constant 0 : i32
    return %arg0, %c0_i32 : i32, i32
  }
}

</mosaic_0001>

<bundles_post_ra>
// kernel: tpu_custom_call.1
= control target key start
LH: loop header
LB: loop body
LE: loop exit
PB: predicated region body
PF: predicated region fallthrough
CT: control target
= control target key end

     0   :  { %10 = vsyncpa [#allocation3], 0  ;;  %s1429_s0 = inlined_call_operand.vmem [shape: s32[16,8], index: 0, kind: input, shape index: {}]   ;;  %s1430_s1 = inlined_call_operand.vmem [shape: s32[16,8], index: 1, kind: input, shape index: {}]   ;;  %s1431_s2 = inlined_call_operand.vmem [shape: f32[16,8], index: 2, kind: input, shape index: {}]   ;;  %s1432_s3 = inlined_call_operand.hbm [shape: f32[128,128], index: 3, kind: input, shape index: {}]   ;;  %s1433_s4 = inlined_call_operand.hbm [shape: f32[128,128], index: 4, kind: input, shape index: {}]   ;;  %s1434_s5 = inlined_call_operand.hbm [shape: f32[16,128], index: 5, kind: output, shape index: {}]  }
   0x1   :  { %11 = vsyncpa [#allocation6], 0 }
   0x2   :  { %12 = vsyncpa [#allocation4], 0  ;;  %s1037_s18 = smov [#allocation2]  }
   0x3   :  { %s24_s19 = sshll.u32 %s1037_s18, 4  ;;  %s25_s19 = int_to_ptr.vmem [resolvable:$true] %s24_s19 }
   0x4   :  { %s979_s20 = scalar_lea.vmem %s25_s19, 2048  ;;  %p984_p1 = scmp.lt.s32.totalorder %s25_s19, %s25_s19 }
   0x5   :  { %p980_p0 = scmp.ne.s32.totalorder %s25_s19, %s979_s20  ;;  %p985_p2 = scmp.lt.s32.totalorder %s979_s20, %s979_s20 }
   0x7   :  { %p986_p3 = por %p985_p2, %p984_p1 }
   0x9   :  { %p987_p4 = pnand %p986_p3, %p980_p0 }
   0xb   :  { %990 = shalt.err (!%p987_p4)
}
   0xc   :  { %s1038_s21 = smov 128   ;;  %s1039_s22 = smov 8  }
   0xd   :  { %30 = dma.hbm_to_vmem [thread:$0]  %s1432_s3, 2048, %s25_s19, [#allocation3], %s1038_s21, %s1038_s21, %s1039_s22  }
   0xe   :  { %s1040_s25 = smov [#allocation5]  }
   0xf   :  { %s36_s26 = sshll.u32 %s1040_s25, 4  ;;  %s37_s26 = int_to_ptr.vmem [resolvable:$true] %s36_s26 }
  0x10   :  { %s999_s27 = scalar_lea.vmem %s37_s26, 2048  ;;  %p1004_p6 = scmp.lt.s32.totalorder %s37_s26, %s37_s26 }
  0x11   :  { %p1000_p5 = scmp.ne.s32.totalorder %s37_s26, %s999_s27  ;;  %p1005_p7 = scmp.lt.s32.totalorder %s999_s27, %s999_s27 }
  0x13   :  { %p1006_p8 = por %p1005_p7, %p1004_p6 }
  0x15   :  { %p1007_p9 = pnand %p1006_p8, %p1000_p5 }
  0x17   :  { %1010 = shalt.err (!%p1007_p9)
}
  0x18   :  { %42 = dma.hbm_to_vmem [thread:$0]  %s1433_s4, 2048, %s37_s26, [#allocation6], %s1038_s21, %s1038_s21, %s1039_s22  }
  0x19   :  { %1031 = dma.done.wait [#allocation3], 2048  }
  0x1a   :  { %1032 = vsyncadd [#allocation3], 4294965248 }
  0x1b   :  { %1033 = dma.done.wait [#allocation6], 2048  }
  0x1c   :  { %1034 = vsyncadd [#allocation6], 4294965248  ;;  %v55_v0 = vlaneseq  ;;  %v1097_v4 = vld [vmem:[%s1430_s1] sm:$0xff]  ;;  %v1118_v11 = vld [vmem:[%s1429_s0 + $0x8] sm:$0xff]  ;;  %vm715_vm5 = vcmask 64512  }
  0x1d   :  { %v1102_v5 = vld [vmem:[%s1429_s0] sm:$0xff]  ;;  %v1138_v19 = vld [vmem:[%s1430_s1 + $0x8] sm:$0xff]  ;;  %v600_v53 = vld [vmem:[#allocation2 + $0x78] sm:$0xff] }
  0x1e   :  { %v1086_v1 = vshrl.u32 %v55_v0, 7  ;;  %v1173_v34 = vld [vmem:[%s1431_s2] sm:$0xff]  ;;  %v1193_v42 = vld [vmem:[%s1431_s2 + $0x8] sm:$0xff]  ;;  %891 = vmatprep.subr.mxu0 %v600_v53  ;;  %v599_v55 = vld [vmem:[#allocation2 + $0x70] sm:$0xff]  ;;  %s1042_s2 = smov [#allocation7]  }
  0x1f   :  { %892 = vmatpush3.msra.mxu0 %v600_v53  ;;  %v598_v56 = vld [vmem:[#allocation2 + $0x68] sm:$0xff]  ;;  %v597_v59 = vld [vmem:[#allocation2 + $0x60] sm:$0xff]  ;;  %v596_v61 = vld [vmem:[#allocation2 + $0x58] sm:$0xff]  ;;  %s826_s13 = sshll.u32 %s1042_s2, 4  ;;  %s827_s13 = int_to_ptr.vmem [resolvable:$true] %s826_s13 }
  0x20   :  { %v1089_v2 = vsub.s32 0, %v1086_v1  ;;  %v1092_v3 = vsub.s32 1, %v1086_v1  ;;  %v1113_v10 = vsub.s32 2, %v1086_v1  ;;  %v1121_v12 = vsub.s32 7, %v1086_v1  ;;  %893 = vmatprep.subr.mxu0 %v599_v55  ;;  %v595_v62 = vld [vmem:[#allocation2 + $0x50] sm:$0xff]  ;;  %v733_v53 = vld [vmem:[#allocation5 + $0x28] sm:$0xff]  ;;  %p1016_p11 = scmp.lt.s32.totalorder %s827_s13, %s827_s13 }
  0x21   :  { %v1149_v24 = vsub.s32 3, %v1086_v1  ;;  %v1160_v29 = vsub.s32 4, %v1086_v1  ;;  %v1180_v37 = vsub.s32 5, %v1086_v1  ;;  %v1200_v45 = vsub.s32 6, %v1086_v1  ;;  %894 = vmatpush3.msra.mxu0 %v599_v55  ;;  %v594_v1 = vld [vmem:[#allocation2 + $0x48] sm:$0xff]  ;;  %s1011_s14 = scalar_lea.vmem %s827_s13, 256 }
  0x22   :  { %v188_v6 = vrot.slane %v1097_v4, %v1089_v2  ;;  %v60_v7 = vrot.slane %v1102_v5, %v1089_v2  ;;  %v195_v8 = vrot.slane %v1097_v4, %v1092_v3  ;;  %v67_v9 = vrot.slane %v1102_v5, %v1092_v3  ;;  %895 = vmatprep.subr.mxu0 %v598_v56  ;;  %p1012_p10 = scmp.ne.s32.totalorder %s827_s13, %s1011_s14  ;;  %p1017_p12 = scmp.lt.s32.totalorder %s1011_s14, %s1011_s14 }
  0x23   :  { %v116_v13 = vrot.slane %v1118_v11, %v1089_v2  ;;  %v74_v14 = vrot.slane %v1102_v5, %v1113_v10  ;;  %v109_v15 = vrot.slane %v1102_v5, %v1121_v12  ;;  %v237_v16 = vrot.slane %v1097_v4, %v1121_v12  ;;  %896 = vmatpush3.msra.mxu0 %v598_v56 }
  0x24   :  { %190 = vbcast.lane.b32.xlu1 %v188_v6, 256  ;;  %62 = vbcast.lane.b32.xlu0 %v60_v7, 256  ;;  %v202_v17 = vrot.slane %v1097_v4, %v1113_v10  ;;  %v123_v18 = vrot.slane %v1118_v11, %v1092_v3  ;;  %v165_v20 = vrot.slane %v1118_v11, %v1121_v12  ;;  %v1041_v56 = vmov 0.0   ;;  %p1018_p13 = por %p1017_p12, %p1016_p11 }
  0x25   :  { %v293_v21 = vrot.slane %v1138_v19, %v1121_v12  ;;  %v251_v22 = vrot.slane %v1138_v19, %v1092_v3  ;;  %v244_v23 = vrot.slane %v1138_v19, %v1089_v2  ;;  %v130_v25 = vrot.slane %v1118_v11, %v1113_v10  ;;  %897 = vmatprep.subr.mxu0 %v597_v59 }
  0x26   :  { %v81_v26 = vrot.slane %v1102_v5, %v1149_v24  ;;  %v258_v27 = vrot.slane %v1138_v19, %v1113_v10  ;;  %v209_v28 = vrot.slane %v1097_v4, %v1149_v24  ;;  %v137_v30 = vrot.slane %v1118_v11, %v1149_v24  ;;  %898 = vmatpush3.msra.mxu0 %v597_v59  ;;  %p1019_p0 = pnand %p1018_p13, %p1012_p10 }
  0x27   :  { %v88_v31 = vrot.slane %v1102_v5, %v1160_v29  ;;  %v265_v32 = vrot.slane %v1138_v19, %v1149_v24  ;;  %v216_v33 = vrot.slane %v1097_v4, %v1160_v29  ;;  %v371_v35 = vrot.slane %v1173_v34, %v1092_v3  ;;  %899 = vmatprep.subr.mxu0 %v596_v61 }
  0x28   :  { %197 = vbcast.lane.b32.xlu1 %v195_v8, 256  ;;  %69 = vbcast.lane.b32.xlu0 %v67_v9, 256  ;;  %v364_v36 = vrot.slane %v1173_v34, %v1089_v2  ;;  %v144_v38 = vrot.slane %v1118_v11, %v1160_v29  ;;  %v95_v39 = vrot.slane %v1102_v5, %v1180_v37  ;;  %v591_v8 = vld [vmem:[#allocation2 + $0x30] sm:$0xff] }
  0x29   :  { %v272_v40 = vrot.slane %v1138_v19, %v1160_v29  ;;  %v223_v41 = vrot.slane %v1097_v4, %v1180_v37  ;;  %v420_v43 = vrot.slane %v1193_v42, %v1089_v2  ;;  %v378_v44 = vrot.slane %v1173_v34, %v1113_v10  ;;  %900 = vmatpush3.msra.mxu0 %v596_v61 }
  0x2a   :  { %v102_v46 = vrot.slane %v1102_v5, %v1200_v45  ;;  %v427_v47 = vrot.slane %v1193_v42, %v1092_v3  ;;  %v230_v48 = vrot.slane %v1097_v4, %v1200_v45  ;;  %v151_v49 = vrot.slane %v1118_v11, %v1180_v37  ;;  %901 = vmatprep.subr.mxu0 %v595_v62  ;;  %v593_v4 = vld [vmem:[#allocation2 + $0x40] sm:$0xff]  ;;  %v592_v5 = vld [vmem:[#allocation2 + $0x38] sm:$0xff] }
  0x2b   :  { %v385_v50 = vrot.slane %v1173_v34, %v1149_v24  ;;  %v279_v51 = vrot.slane %v1138_v19, %v1180_v37  ;;  %v434_v52 = vrot.slane %v1193_v42, %v1113_v10  ;;  %v158_v54 = vrot.slane %v1118_v11, %v1200_v45  ;;  %902 = vmatpush3.msra.mxu0 %v595_v62  ;;  %v590_v11 = vld [vmem:[#allocation2 + $0x28] sm:$0xff] }
  0x2c   :  { %118 = vbcast.lane.b32.xlu1 %v116_v13, 256  ;;  %76 = vbcast.lane.b32.xlu0 %v74_v14, 256  ;;  %v392_v57 = vrot.slane %v1173_v34, %v1160_v29  ;;  %v286_v58 = vrot.slane %v1138_v19, %v1200_v45  ;;  %v441_v60 = vrot.slane %v1193_v42, %v1149_v24  ;;  %v589_v13 = vld [vmem:[#allocation2 + $0x20] sm:$0xff]  ;;  %v588_v14 = vld [vmem:[#allocation2 + $0x18] sm:$0xff] }
  0x2d   :  { %v399_v63 = vrot.slane %v1173_v34, %v1180_v37  ;;  %v406_v2 = vrot.slane %v1173_v34, %v1200_v45  ;;  %v448_v3 = vrot.slane %v1193_v42, %v1160_v29  ;;  %903 = vmatprep.subr.mxu0 %v594_v1  ;;  %v413_v6 = vrot.slane %v1173_v34, %v1121_v12  ;;  %v585_v19 = vld [vmem:[#allocation2] sm:$0xff] }
  0x2e   :  { %904 = vmatpush3.msra.mxu0 %v594_v1  ;;  %v455_v7 = vrot.slane %v1193_v42, %v1180_v37  ;;  %v469_v9 = vrot.slane %v1193_v42, %v1121_v12  ;;  %v462_v10 = vrot.slane %v1193_v42, %v1200_v45  ;;  %v586_v12 = vld [vmem:[#allocation2 + $0x8] sm:$0xff]  ;;  %v716_v29 = vsel %vm715_vm5, %v1173_v34, 0.0 }
  0x2f   :  { %905 = vmatprep.subr.mxu0 %v593_v4  ;;  %v737_v45 = vld [vmem:[#allocation5 + $0x48] sm:$0xff] }
  0x30   :  { %204 = vbcast.lane.b32.xlu1 %v202_v17, 256  ;;  %125 = vbcast.lane.b32.xlu0 %v123_v18, 256  ;;  %v742_v17 = vld [vmem:[#allocation5 + $0x70] sm:$0xff]  ;;  %v741_v18 = vld [vmem:[#allocation5 + $0x68] sm:$0xff] }
  0x31   :  { %906 = vmatpush3.msra.mxu0 %v593_v4 }
  0x32   :  { %907 = vmatprep.subr.mxu0 %v592_v5 }
  0x33   :  { %908 = vmatpush3.msra.mxu0 %v592_v5 }
  0x34   :  { %253 = vbcast.lane.b32.xlu1 %v251_v22, 256  ;;  %246 = vbcast.lane.b32.xlu0 %v244_v23, 256  ;;  %v738_v22 = vld [vmem:[#allocation5 + $0x50] sm:$0xff]  ;;  %v1251_v23 = vand.u32 127, %v55_v0 }
  0x35   :  { %909 = vmatprep.subr.mxu0 %v591_v8 }
  0x36   :  { %910 = vmatpush3.msra.mxu0 %v591_v8 }
  0x37   :  { %911 = vmatprep.subr.mxu0 %v590_v11 }
  0x38   :  { %132 = vbcast.lane.b32.xlu1 %v130_v25, 256  ;;  %83 = vbcast.lane.b32.xlu0 %v81_v26, 256 }
  0x39   :  { %912 = vmatpush3.msra.mxu0 %v590_v11 }
  0x3a   :  { %913 = vmatprep.subr.mxu0 %v589_v13 }
  0x3b   :  { %914 = vmatpush3.msra.mxu0 %v589_v13 }
  0x3c   :  { %260 = vbcast.lane.b32.xlu1 %v258_v27, 256  ;;  %211 = vbcast.lane.b32.xlu0 %v209_v28, 256 }
  0x3d   :  { %915 = vmatprep.subr.mxu0 %v588_v14 }
  0x3e   :  { %916 = vmatpush3.msra.mxu0 %v588_v14 }
  0x40   :  { %139 = vbcast.lane.b32.xlu1 %v137_v30, 256  ;;  %90 = vbcast.lane.b32.xlu0 %v88_v31, 256 }
  0x44   :  { %267 = vbcast.lane.b32.xlu1 %v265_v32, 256  ;;  %218 = vbcast.lane.b32.xlu0 %v216_v33, 256  ;;  %v719_v32 = vsel %vm715_vm5, %v1193_v42, 0.0 }
  0x48   :  { %373 = vbcast.lane.b32.xlu1 %v371_v35, 256  ;;  %366 = vbcast.lane.b32.xlu0 %v364_v36, 256 }
  0x4c   :  { %146 = vbcast.lane.b32.xlu1 %v144_v38, 256  ;;  %97 = vbcast.lane.b32.xlu0 %v95_v39, 256 }
  0x50   :  { %274 = vbcast.lane.b32.xlu1 %v272_v40, 256  ;;  %225 = vbcast.lane.b32.xlu0 %v223_v41, 256 }
  0x54   :  { %422 = vbcast.lane.b32.xlu1 %v420_v43, 256  ;;  %380 = vbcast.lane.b32.xlu0 %v378_v44, 256 }
  0x58   :  { %104 = vbcast.lane.b32.xlu1 %v102_v46, 256  ;;  %429 = vbcast.lane.b32.xlu0 %v427_v47, 256  ;;  %v736_v46 = vld [vmem:[#allocation5 + $0x40] sm:$0xff] }
  0x5c   :  { %232 = vbcast.lane.b32.xlu1 %v230_v48, 256  ;;  %153 = vbcast.lane.b32.xlu0 %v151_v49, 256  ;;  %v735_v49 = vld [vmem:[#allocation5 + $0x38] sm:$0xff] }
  0x60   :  { %387 = vbcast.lane.b32.xlu1 %v385_v50, 256  ;;  %281 = vbcast.lane.b32.xlu0 %v279_v51, 256  ;;  %v734_v50 = vld [vmem:[#allocation5 + $0x30] sm:$0xff] }
  0x64   :  { %111 = vbcast.lane.b32.xlu1 %v109_v15, 256  ;;  %436 = vbcast.lane.b32.xlu0 %v434_v52, 256  ;;  %v587_v15 = vld [vmem:[#allocation2 + $0x10] sm:$0xff] }
  0x65   :  { %917 = vmatprep.subr.mxu0 %v587_v15 }
  0x66   :  { %918 = vmatpush3.msra.mxu0 %v587_v15 }
  0x67   :  { %919 = vmatprep.subr.mxu0 %v586_v12 }
  0x68   :  { %239 = vbcast.lane.b32.xlu1 %v237_v16, 256  ;;  %160 = vbcast.lane.b32.xlu0 %v158_v54, 256  ;;  %v743_v16 = vld [vmem:[#allocation5 + $0x78] sm:$0xff]  ;;  %v732_v54 = vld [vmem:[#allocation5 + $0x20] sm:$0xff] }
  0x69   :  { %926 = vmatprep.subr.mxu1 %v743_v16  ;;  %920 = vmatpush3.msra.mxu0 %v586_v12 }
  0x6a   :  { %927 = vmatpush3.msra.mxu1 %v743_v16  ;;  %921 = vmatprep.subr.mxu0 %v585_v19 }
  0x6b   :  { %928 = vmatprep.subr.mxu1 %v742_v17  ;;  %922 = vmatpush3.msra.mxu0 %v585_v19 }
  0x6c   :  { %394 = vbcast.lane.b32.xlu1 %v392_v57, 256  ;;  %288 = vbcast.lane.b32.xlu0 %v286_v58, 256 }
  0x6d   :  { %929 = vmatpush3.msra.mxu1 %v742_v17 }
  0x6e   :  { %930 = vmatprep.subr.mxu1 %v741_v18 }
  0x6f   :  { %931 = vmatpush3.msra.mxu1 %v741_v18 }
  0x70   :  { %167 = vbcast.lane.b32.xlu1 %v165_v20, 256  ;;  %443 = vbcast.lane.b32.xlu0 %v441_v60, 256  ;;  %v740_v20 = vld [vmem:[#allocation5 + $0x60] sm:$0xff]  ;;  %v731_v60 = vld [vmem:[#allocation5 + $0x18] sm:$0xff] }
  0x71   :  { %932 = vmatprep.subr.mxu1 %v740_v20 }
  0x72   :  { %933 = vmatpush3.msra.mxu1 %v740_v20 }
  0x74   :  { %401 = vbcast.lane.b32.xlu1 %v399_v63, 256  ;;  %295 = vbcast.lane.b32.xlu0 %v293_v21, 256  ;;  %v739_v21 = vld [vmem:[#allocation5 + $0x58] sm:$0xff] }
  0x75   :  { %934 = vmatprep.subr.mxu1 %v739_v21 }
  0x76   :  { %935 = vmatpush3.msra.mxu1 %v739_v21 }
  0x77   :  { %936 = vmatprep.subr.mxu1 %v738_v22 }
  0x78   :  { %408 = vbcast.lane.b32.xlu1 %v406_v2, 256  ;;  %450 = vbcast.lane.b32.xlu0 %v448_v3, 256 }
  0x79   :  { %937 = vmatpush3.msra.mxu1 %v738_v22 }
  0x7a   :  { %938 = vmatprep.subr.mxu1 %v737_v45 }
  0x7b   :  { %939 = vmatpush3.msra.mxu1 %v737_v45 }
  0x7c   :  { %415 = vbcast.lane.b32.xlu1 %v413_v6, 256  ;;  %457 = vbcast.lane.b32.xlu0 %v455_v7, 256 }
  0x7d   :  { %940 = vmatprep.subr.mxu1 %v736_v46 }
  0x7e   :  { %941 = vmatpush3.msra.mxu1 %v736_v46 }
  0x7f   :  { %942 = vmatprep.subr.mxu1 %v735_v49 }
  0x80   :  { %471 = vbcast.lane.b32.xlu1 %v469_v9, 256  ;;  %464 = vbcast.lane.b32.xlu0 %v462_v10, 256 }
  0x81   :  { %943 = vmatpush3.msra.mxu1 %v735_v49 }
  0x82   :  { %944 = vmatprep.subr.mxu1 %v734_v50 }
  0x83   :  { %945 = vmatpush3.msra.mxu1 %v734_v50 }
  0x84   :  { %946 = vmatprep.subr.mxu1 %v733_v53 }
  0x85   :  { %947 = vmatpush3.msra.mxu1 %v733_v53 }
  0x86   :  { %948 = vmatprep.subr.mxu1 %v732_v54 }
  0x87   :  { %949 = vmatpush3.msra.mxu1 %v732_v54 }
  0x88   :  { %950 = vmatprep.subr.mxu1 %v731_v60 }
  0x89   :  { %951 = vmatpush3.msra.mxu1 %v731_v60 }
  0x96   :  { %v191_v24 = vpop.permute.xlu1 %190  ;;  %v63_v25 = vpop.permute.xlu0 %62 }
  0x97   :  { %vm297_vm0 = vcmp.eq.s32.totalorder %v1251_v23, %v191_v24  ;;  %vm169_vm1 = vcmp.eq.s32.totalorder %v1251_v23, %v63_v25 }
  0x98   :  { %vm1255_vm2 = vmor %vm169_vm1, %vm297_vm0 }
  0x99   :  { %v839_v58 = vsel %vm1255_vm2, 1.0, %v1041_v56  ;;  %vm617_vm2 = vcmask 1041409  }
  0x9a   :  { %v198_v27 = vpop.permute.xlu1 %197  ;;  %v70_v28 = vpop.permute.xlu0 %69 }
  0x9b   :  { %vm298_vm3 = vcmp.eq.s32.totalorder %v1251_v23, %v198_v27  ;;  %vm170_vm4 = vcmp.eq.s32.totalorder %v1251_v23, %v70_v28 }
  0x9c   :  { %vm1261_vm6 = vmor %vm170_vm4, %vm298_vm3 }
  0x9d   :  { %v840_v57 = vsel %vm1261_vm6, 1.0, %v1041_v56 }
  0x9e   :  { %v119_v30 = vpop.permute.xlu1 %118  ;;  %v77_v31 = vpop.permute.xlu0 %76 }
  0x9f   :  { %vm177_vm7 = vcmp.eq.s32.totalorder %v1251_v23, %v119_v30  ;;  %vm171_vm8 = vcmp.eq.s32.totalorder %v1251_v23, %v77_v31  ;;  %717 = vadd.xlane.f32.xlu0 %v716_v29 }
  0xa2   :  { %v205_v33 = vpop.permute.xlu1 %204  ;;  %v126_v35 = vpop.permute.xlu0 %125 }
  0xa3   :  { %vm299_vm9 = vcmp.eq.s32.totalorder %v1251_v23, %v205_v33  ;;  %vm178_vm10 = vcmp.eq.s32.totalorder %v1251_v23, %v126_v35 }
  0xa4   :  { %vm1271_vm11 = vmor %vm171_vm8, %vm299_vm9  ;;  %720 = vadd.xlane.f32.xlu1 %v719_v32 }
  0xa5   :  { %v841_v17 = vsel %vm1271_vm11, 1.0, %v1041_v56 }
  0xa6   :  { %v254_v34 = vpop.permute.xlu1 %253  ;;  %v247_v37 = vpop.permute.xlu0 %246 }
  0xa7   :  { %vm306_vm12 = vcmp.eq.s32.totalorder %v1251_v23, %v254_v34  ;;  %vm305_vm13 = vcmp.eq.s32.totalorder %v1251_v23, %v247_v37 }
  0xa8   :  { %vm1277_vm14 = vmor %vm178_vm10, %vm306_vm12 }
  0xa9   :  { %vm1283_vm15 = vmor %vm177_vm7, %vm305_vm13  ;;  %v848_v27 = vsel %vm1277_vm14, 1.0, %v1041_v56  ;;  %vm619_vm7 = vcmask 1042434   ;;  %vm621_vm13 = vcmask 1043459  }
  0xaa   :  { %v133_v40 = vpop.permute.xlu1 %132  ;;  %v1287_v41 = vpop.permute.xlu0 %83  ;;  %v847_v16 = vsel %vm1283_vm15, 1.0, %v1041_v56 }
  0xab   :  { %vm179_vm0 = vcmp.eq.s32.totalorder %v1251_v23, %v133_v40  ;;  %vm172_vm5 = vcmp.eq.s32.totalorder %v1251_v23, %v1287_v41 }
  0xae   :  { %v261_v42 = vpop.permute.xlu1 %260  ;;  %v1290_v43 = vpop.permute.xlu0 %211 }
  0xaf   :  { %vm307_vm1 = vcmp.eq.s32.totalorder %v1251_v23, %v261_v42  ;;  %vm300_vm4 = vcmp.eq.s32.totalorder %v1251_v23, %v1290_v43 }
  0xb0   :  { %vm1293_vm3 = vmor %vm179_vm0, %vm307_vm1 }
  0xb1   :  { %vm316_vm6 = vmor %vm172_vm5, %vm300_vm4 }
  0xb2   :  { %v1297_v47 = vpop.permute.xlu1 %139  ;;  %v1299_v48 = vpop.permute.xlu0 %90  ;;  %v842_v45 = vsel %vm316_vm6, 1.0, %v1041_v56 }
  0xb3   :  { %vm173_vm9 = vcmp.eq.s32.totalorder %v1251_v23, %v1299_v48  ;;  %vm180_vm12 = vcmp.eq.s32.totalorder %v1251_v23, %v1297_v47 }
  0xb6   :  { %v1301_v51 = vpop.permute.xlu1 %267  ;;  %v1303_v52 = vpop.permute.xlu0 %218 }
  0xb7   :  { %vm301_vm8 = vcmp.eq.s32.totalorder %v1251_v23, %v1303_v52  ;;  %vm308_vm11 = vcmp.eq.s32.totalorder %v1251_v23, %v1301_v51 }
  0xb8   :  { %vm317_vm10 = vmor %vm173_vm9, %vm301_vm8 }
  0xb9   :  { %vm324_vm14 = vmor %vm180_vm12, %vm308_vm11 }
  0xba   :  { %v374_v55 = vpop.permute.xlu1 %373  ;;  %v367_v59 = vpop.permute.xlu0 %366 }
  0xbb   :  { %v474_v61 = vmul.f32 %v840_v57, %v374_v55  ;;  %v473_v62 = vmul.f32 %v839_v58, %v367_v59  ;;  %v849_v58 = vsel %vm1293_vm3, 1.0, %v1041_v56 }
  0xbd   :  { %v495_v63 = vrot.slane %v474_v61, 4  ;;  %v489_v1 = vrot.slane %v473_v62, 4 }
  0xbe   :  { %v1311_v2 = vpop.permute.xlu1 %146  ;;  %v1313_v3 = vpop.permute.xlu0 %97 }
  0xbf   :  { %v496_v4 = vadd.f32 %v495_v63, %v474_v61  ;;  %v490_v5 = vadd.f32 %v489_v1, %v473_v62  ;;  %vm174_vm0 = vcmp.eq.s32.totalorder %v1251_v23, %v1313_v3  ;;  %vm181_vm4 = vcmp.eq.s32.totalorder %v1251_v23, %v1311_v2 }
  0xc1   :  { %v497_v6 = vrot.slane %v496_v4, 2  ;;  %v491_v7 = vrot.slane %v490_v5, 2 }
  0xc2   :  { %v1315_v8 = vpop.permute.xlu1 %274  ;;  %v1317_v9 = vpop.permute.xlu0 %225 }
  0xc3   :  { %v498_v10 = vadd.f32 %v497_v6, %v496_v4  ;;  %v492_v11 = vadd.f32 %v491_v7, %v490_v5  ;;  %vm302_vm15 = vcmp.eq.s32.totalorder %v1251_v23, %v1317_v9  ;;  %vm309_vm1 = vcmp.eq.s32.totalorder %v1251_v23, %v1315_v8 }
  0xc4   :  { %vm318_vm3 = vmor %vm174_vm0, %vm302_vm15 }
  0xc5   :  { %v499_v13 = vrot.slane %v498_v10, 1  ;;  %v493_v14 = vrot.slane %v492_v11, 1  ;;  %vm1373_vm5 = vmor %vm181_vm4, %vm309_vm1 }
  0xc6   :  { %v423_v15 = vpop.permute.xlu1 %422  ;;  %v381_v12 = vpop.permute.xlu0 %380 }
  0xc7   :  { %v500_v18 = vadd.f32 %v499_v13, %v498_v10  ;;  %v494_v19 = vadd.f32 %v493_v14, %v492_v11  ;;  %v481_v20 = vmul.f32 %v847_v16, %v423_v15  ;;  %v475_v21 = vmul.f32 %v841_v17, %v381_v12 }
  0xc8   :  { %v843_v14 = vsel %vm317_vm10, 1.0, %v1041_v56  ;;  %vm623_vm10 = vcmask 1044484  }
  0xc9   :  { %v618_v22 = vsel %vm617_vm2, %v500_v18, %v494_v19  ;;  %v537_v24 = vrot.slane %v481_v20, 4  ;;  %v501_v25 = vrot.slane %v475_v21, 4  ;;  %v850_v19 = vsel %vm324_vm14, 1.0, %v1041_v56 }
  0xca   :  { %v1326_v26 = vpop.permute.xlu1 %104  ;;  %v430_v28 = vpop.permute.xlu0 %429 }
  0xcb   :  { %v538_v0 = vadd.f32 %v537_v24, %v481_v20  ;;  %v502_v29 = vadd.f32 %v501_v25, %v475_v21  ;;  %v482_v30 = vmul.f32 %v848_v27, %v430_v28  ;;  %vm175_vm6 = vcmp.eq.s32.totalorder %v1251_v23, %v1326_v26 }
  0xcc   :  { %v844_v28 = vsel %vm318_vm3, 1.0, %v1041_v56 }
  0xcd   :  { %v539_v31 = vrot.slane %v538_v0, 2  ;;  %v503_v32 = vrot.slane %v502_v29, 2  ;;  %v543_v33 = vrot.slane %v482_v30, 4 }
  0xce   :  { %v1335_v35 = vpop.permute.xlu1 %232  ;;  %v1337_v36 = vpop.permute.xlu0 %153 }
  0xcf   :  { %v540_v34 = vadd.f32 %v539_v31, %v538_v0  ;;  %v504_v37 = vadd.f32 %v503_v32, %v502_v29  ;;  %v544_v38 = vadd.f32 %v543_v33, %v482_v30  ;;  %vm182_vm11 = vcmp.eq.s32.totalorder %v1251_v23, %v1337_v36 }
  0xd1   :  { %v505_v39 = vrot.slane %v504_v37, 1  ;;  %v545_v40 = vrot.slane %v544_v38, 2  ;;  %v541_v46 = vrot.slane %v540_v34, 1 }
  0xd2   :  { %v388_v42 = vpop.permute.xlu1 %387  ;;  %v1340_v43 = vpop.permute.xlu0 %281 }
  0xd3   :  { %v506_v49 = vadd.f32 %v505_v39, %v504_v37  ;;  %v546_v50 = vadd.f32 %v545_v40, %v544_v38  ;;  %v476_v41 = vmul.f32 %v842_v45, %v388_v42  ;;  %v542_v60 = vadd.f32 %v541_v46, %v540_v34 }
  0xd4   :  { %vm310_vm9 = vcmp.eq.s32.totalorder %v1251_v23, %v1340_v43  ;;  %v851_v37 = vsel %vm1373_vm5, 1.0, %v1041_v56 }
  0xd5   :  { %v547_v53 = vrot.slane %v546_v50, 1  ;;  %v507_v54 = vrot.slane %v476_v41, 4  ;;  %v620_v55 = vsel %vm619_vm7, %v506_v49, %v618_v22  ;;  %vm1385_vm12 = vmor %vm182_vm11, %vm310_vm9 }
  0xd6   :  { %v1343_v57 = vpop.permute.xlu1 %111  ;;  %v437_v59 = vpop.permute.xlu0 %436 }
  0xd7   :  { %v548_v61 = vadd.f32 %v547_v53, %v546_v50  ;;  %v508_v62 = vadd.f32 %v507_v54, %v476_v41  ;;  %v483_v63 = vmul.f32 %v849_v58, %v437_v59  ;;  %vm176_vm14 = vcmp.eq.s32.totalorder %v1251_v23, %v1343_v57 }
  0xd8   :  { %v852_v57 = vsel %vm1385_vm12, 1.0, %v1041_v56 }
  0xd9   :  { %v631_v1 = vsel %vm617_vm2, %v548_v61, %v542_v60  ;;  %v509_v4 = vrot.slane %v508_v62, 2  ;;  %v549_v5 = vrot.slane %v483_v63, 4  ;;  %vm303_vm2 = vcmp.eq.s32.totalorder %v1251_v23, %v1335_v35 }
  0xda   :  { %v240_v6 = vpop.permute.xlu1 %239  ;;  %v1353_v7 = vpop.permute.xlu0 %160  ;;  %vm319_vm8 = vmor %vm175_vm6, %vm303_vm2  ;;  %vm625_vm6 = vcmask 1045509  }
  0xdb   :  { %v510_v44 = vadd.f32 %v509_v4, %v508_v62  ;;  %v550_v10 = vadd.f32 %v549_v5, %v483_v63  ;;  %v845_v35 = vsel %vm319_vm8, 1.0, %v1041_v56  ;;  %vm183_vm1 = vcmp.eq.s32.totalorder %v1251_v23, %v1353_v7 }
  0xdc   :  { %vm629_vm8 = vcmask 1047559  }
  0xdd   :  { %v511_v11 = vrot.slane %v510_v44, 1  ;;  %v551_v13 = vrot.slane %v550_v10, 2 }
  0xde   :  { %v395_v52 = vpop.permute.xlu1 %394  ;;  %v289_v15 = vpop.permute.xlu0 %288 }
  0xdf   :  { %v512_v48 = vadd.f32 %v511_v11, %v510_v44  ;;  %v552_v16 = vadd.f32 %v551_v13, %v550_v10  ;;  %v477_v17 = vmul.f32 %v843_v14, %v395_v52  ;;  %vm311_vm15 = vcmp.eq.s32.totalorder %v1251_v23, %v289_v15 }
  0xe0   :  { %vm1402_vm2 = vmor %vm183_vm1, %vm311_vm15 }
  0xe1   :  { %v553_v12 = vrot.slane %v552_v16, 1  ;;  %v513_v18 = vrot.slane %v477_v17, 4  ;;  %v622_v51 = vsel %vm621_vm13, %v512_v48, %v620_v55 }
  0xe2   :  { %v168_v47 = vpop.permute.xlu1 %167  ;;  %v444_v20 = vpop.permute.xlu0 %443 }
  0xe3   :  { %v554_v21 = vadd.f32 %v553_v12, %v552_v16  ;;  %v514_v22 = vadd.f32 %v513_v18, %v477_v17  ;;  %v484_v24 = vmul.f32 %v850_v19, %v444_v20  ;;  %vm184_vm4 = vcmp.eq.s32.totalorder %v1251_v23, %v168_v47 }
  0xe5   :  { %v632_v9 = vsel %vm619_vm7, %v554_v21, %v631_v1  ;;  %v515_v3 = vrot.slane %v514_v22, 2  ;;  %v555_v25 = vrot.slane %v484_v24, 4  ;;  %vm304_vm7 = vcmp.eq.s32.totalorder %v1251_v23, %v240_v6 }
  0xe6   :  { %v402_v8 = vpop.permute.xlu1 %401  ;;  %v296_v0 = vpop.permute.xlu0 %295  ;;  %vm320_vm0 = vmor %vm176_vm14, %vm304_vm7 }
  0xe7   :  { %v516_v2 = vadd.f32 %v515_v3, %v514_v22  ;;  %v556_v29 = vadd.f32 %v555_v25, %v484_v24  ;;  %v478_v30 = vmul.f32 %v844_v28, %v402_v8  ;;  %vm312_vm3 = vcmp.eq.s32.totalorder %v1251_v23, %v296_v0 }
  0xe8   :  { %v846_v54 = vsel %vm320_vm0, 1.0, %v1041_v56  ;;  %vm328_vm5 = vmor %vm184_vm4, %vm312_vm3  ;;  %v853_v23 = vsel %vm1402_vm2, 1.0, %v1041_v56 }
  0xe9   :  { %v517_v31 = vrot.slane %v516_v2, 1  ;;  %v557_v32 = vrot.slane %v556_v29, 2  ;;  %v519_v26 = vrot.slane %v478_v30, 4  ;;  %v854_v13 = vsel %vm328_vm5, 1.0, %v1041_v56 }
  0xea   :  { %v409_v34 = vpop.permute.xlu1 %408  ;;  %v451_v36 = vpop.permute.xlu0 %450 }
  0xeb   :  { %v518_v38 = vadd.f32 %v517_v31, %v516_v2  ;;  %v558_v39 = vadd.f32 %v557_v32, %v556_v29  ;;  %v520_v40 = vadd.f32 %v519_v26, %v478_v30  ;;  %v479_v42 = vmul.f32 %v845_v35, %v409_v34 }
  0xec   :  { %v485_v45 = vmul.f32 %v851_v37, %v451_v36 }
  0xed   :  { %v559_v43 = vrot.slane %v558_v39, 1  ;;  %v521_v46 = vrot.slane %v520_v40, 2  ;;  %v525_v49 = vrot.slane %v479_v42, 4  ;;  %v624_v50 = vsel %vm623_vm10, %v518_v38, %v622_v51 }
  0xee   :  { %v561_v53 = vrot.slane %v485_v45, 4  ;;  %v416_v55 = vpop.permute.xlu1 %415  ;;  %v458_v58 = vpop.permute.xlu0 %457 }
  0xef   :  { %v560_v59 = vadd.f32 %v559_v43, %v558_v39  ;;  %v522_v60 = vadd.f32 %v521_v46, %v520_v40  ;;  %v526_v61 = vadd.f32 %v525_v49, %v479_v42  ;;  %v480_v62 = vmul.f32 %v846_v54, %v416_v55  ;;  %v730_v43 = vld [vmem:[#allocation5 + $0x10] sm:$0xff]  ;;  %v729_v46 = vld [vmem:[#allocation5 + $0x8] sm:$0xff]  ;;  %v728_v49 = vld [vmem:[#allocation5] sm:$0xff] }
  0xf0   :  { %v562_v63 = vadd.f32 %v561_v53, %v485_v45  ;;  %v486_v1 = vmul.f32 %v852_v57, %v458_v58  ;;  %952 = vmatprep.subr.mxu1 %v730_v43 }
  0xf1   :  { %v523_v4 = vrot.slane %v522_v60, 1  ;;  %v527_v5 = vrot.slane %v526_v61, 2  ;;  %v531_v6 = vrot.slane %v480_v62, 4  ;;  %v633_v7 = vsel %vm621_vm13, %v560_v59, %v632_v9  ;;  %953 = vmatpush3.msra.mxu1 %v730_v43 }
  0xf2   :  { %v563_v44 = vrot.slane %v562_v63, 2  ;;  %v567_v10 = vrot.slane %v486_v1, 4  ;;  %v472_v11 = vpop.permute.xlu1 %471  ;;  %v465_v52 = vpop.permute.xlu0 %464  ;;  %vm627_vm13 = vcmask 1046534   ;;  %954 = vmatprep.subr.mxu1 %v729_v46 }
  0xf3   :  { %v524_v14 = vadd.f32 %v523_v4, %v522_v60  ;;  %v528_v15 = vadd.f32 %v527_v5, %v526_v61  ;;  %v532_v48 = vadd.f32 %v531_v6, %v480_v62  ;;  %v488_v16 = vmul.f32 %v854_v13, %v472_v11  ;;  %955 = vmatpush3.msra.mxu1 %v729_v46 }
  0xf4   :  { %v564_v17 = vadd.f32 %v563_v44, %v562_v63  ;;  %v568_v12 = vadd.f32 %v567_v10, %v486_v1  ;;  %v487_v18 = vmul.f32 %v853_v23, %v465_v52  ;;  %956 = vmatprep.subr.mxu1 %v728_v49 }
  0xf5   :  { %v529_v51 = vrot.slane %v528_v15, 1  ;;  %v533_v47 = vrot.slane %v532_v48, 2  ;;  %v579_v19 = vrot.slane %v488_v16, 4  ;;  %v626_v20 = vsel %vm625_vm6, %v524_v14, %v624_v50  ;;  %957 = vmatpush3.msra.mxu1 %v728_v49 }
  0xf6   :  { %v565_v21 = vrot.slane %v564_v17, 1  ;;  %v569_v22 = vrot.slane %v568_v12, 2  ;;  %v573_v24 = vrot.slane %v487_v18, 4 }
  0xf7   :  { %v534_v9 = vadd.f32 %v533_v47, %v532_v48  ;;  %v580_v3 = vadd.f32 %v579_v19, %v488_v16  ;;  %v530_v56 = vadd.f32 %v529_v51, %v528_v15 }
  0xf8   :  { %v566_v25 = vadd.f32 %v565_v21, %v564_v17  ;;  %v570_v27 = vadd.f32 %v569_v22, %v568_v12  ;;  %v574_v8 = vadd.f32 %v573_v24, %v487_v18 }
  0xf9   :  { %v581_v28 = vrot.slane %v580_v3, 2  ;;  %v535_v0 = vrot.slane %v534_v9, 1  ;;  %v628_v2 = vsel %vm627_vm13, %v530_v56, %v626_v20 }
  0xfa   :  { %v571_v29 = vrot.slane %v570_v27, 1  ;;  %v575_v30 = vrot.slane %v574_v8, 2  ;;  %v634_v31 = vsel %vm623_vm10, %v566_v25, %v633_v7 }
  0xfb   :  { %v582_v32 = vadd.f32 %v581_v28, %v580_v3  ;;  %v536_v26 = vadd.f32 %v535_v0, %v534_v9 }
  0xfc   :  { %v572_v33 = vadd.f32 %v571_v29, %v570_v27  ;;  %v576_v35 = vadd.f32 %v575_v30, %v574_v8 }
  0xfd   :  { %v583_v34 = vrot.slane %v582_v32, 1  ;;  %v630_v37 = vsel %vm629_vm8, %v536_v26, %v628_v2 }
  0xfe   :  { %v577_v36 = vrot.slane %v576_v35, 1  ;;  %923 = vmatprep.mubr.f32.mxu0 %v630_v37  ;;  %v635_v38 = vsel %vm625_vm6, %v572_v33, %v634_v31 }
  0xff   :  { %v584_v39 = vadd.f32 %v583_v34, %v582_v32 }
 0x100   :  { %v578_v40 = vadd.f32 %v577_v36, %v576_v35 }
 0x102   :  { %v636_v42 = vsel %vm627_vm13, %v578_v40, %v635_v38 }
 0x103   :  { %v637_v45 = vsel %vm629_vm8, %v584_v39, %v636_v42 }
 0x104   :  { %924 = vmatmul.mubr.f32.vlgmr.msra.gmra.mxu0 %v637_v45 }
 0x128   :  { %v718_v50 = vpop.xlane.xlu0 %717 }
 0x129   :  { %v722_v53 = vmax.f32 %v718_v50, 1.0 }
 0x12b   :  { %967 = vrcp.f32 %v722_v53 }
 0x12d   :  { %v721_v41 = vpop.xlane.xlu1 %720 }
 0x12e   :  { %v723_v54 = vmax.f32 %v721_v41, 1.0 }
 0x130   :  { %969 = vrcp.f32 %v723_v54 }
 0x138   :  { %v968_v55 = vpop.eup %967 }
 0x13d   :  { %v970_v58 = vpop.eup %969 }
 0x1c4   :  { %v925_v57 = vpop.f32.mrf.mxu0 }
 0x1c5   :  { %v727_v61 = vmul.f32 %v970_v58, %v925_v57 }
 0x1c6   :  { %v706_v59 = vpop.f32.mrf.mxu0 }
 0x1c7   :  { %v726_v60 = vmul.f32 %v968_v55, %v706_v59 }
 0x1c9   :  { %958 = vmatprep.mubr.f32.mxu1 %v726_v60 }
 0x1ca   :  { %959 = vmatmul.mubr.f32.vlgmr.msra.gmra.mxu1 %v727_v61 }
 0x28a   :  { %v960_v62 = vpop.f32.mrf.mxu1 }
 0x28b   :  { %820 = vst [vmem:[#allocation7 + $0x8] sm:$0xff] %v960_v62 }
 0x28c   :  { %v810_v63 = vpop.f32.mrf.mxu1 }
 0x28d   :  { %819 = vst [vmem:[#allocation7] sm:$0xff] %v810_v63 }
 0x28e   :  { %1022 = shalt.err (!%p1019_p0)
}
 0x28f   :  { %832 = dma.vmem_to_hbm [thread:$0]  %s827_s13, 256, %s1434_s5, [#allocation4], %s1038_s21, %s1038_s21, %s1039_s22  }
 0x290   :  { %1035 = dma.done.wait [#allocation4], 256  }
 0x291   :  { %1036 = vsyncadd [#allocation4], 4294967040 }
 0x292   :  { %836 = vsyncpa [#allocation3], 1 }
 0x293   :  { %837 = vsyncpa [#allocation6], 1 }
 0x294   :  { %838 = vsyncpa [#allocation4], 1 }

</bundles_post_ra>
